<compile_context>
chip_gen: v6e
topology: v6e:2x2x1
jax: 0.10.0
libtpu: 0.0.40
codegen_flags: <defaults>
</compile_context>

<pallas_src>
import math

import jax
import jax.numpy as jnp
from jax.experimental import pallas as pl
from jax.experimental.pallas import tpu as pltpu


def make_positional_encoding(d_model: int, max_len: int = 5000,
                             dtype=jnp.float32) -> jnp.ndarray:
    """Sinusoidal table identical to the PyTorch __init__ (pe[:,0::2]=sin,
    pe[:,1::2]=cos). Odd d_model handled by truncating the trailing column."""
    position = jnp.arange(0, max_len, dtype=jnp.float32)[:, None]         # (max_len, 1)
    div_term = jnp.exp(
        jnp.arange(0, d_model, 2, dtype=jnp.float32)
        * (-math.log(10000.0) / d_model)
    )                                                                      # (ceil(d/2),)
    angles = position * div_term                                           # (max_len, ceil(d/2))
    pe = jnp.stack([jnp.sin(angles), jnp.cos(angles)], axis=-1)            # interleave sin/cos
    pe = pe.reshape(max_len, -1)[:, :d_model]
    return pe.astype(dtype)


def _pe_add_kernel(x_ref, pe_ref, o_ref):
    # x_ref: (TB, TR, C) VMEM tile; pe_ref: (TR, C) VMEM tile (broadcast over
    # the batch-block dim). jnp promotion (e.g. bf16 + f32 -> f32) matches the
    # PyTorch `x + self.pe` semantics; out_ref dtype is already result_type.
    o_ref[...] = x_ref[...] + pe_ref[...]


def positional_encoding_forward(x: jnp.ndarray, pe: jnp.ndarray,
                                *, target_block_bytes: int = 2 << 20) -> jnp.ndarray:
    """x: (B, S, D); pe: (max_len, D). Returns x + pe[None, :S, :]."""
    B, S, D = x.shape
    pe_slice = pe[:S, :]                                # like self.pe[:, :x.size(1), :]
    out_dtype = jnp.result_type(x.dtype, pe_slice.dtype)

    LANES = 128
    L = S * D

    # Lane-dense view of the per-batch payload: (S, D) -> (R, 128). If S*D is
    # not a multiple of 128, pad the flattened payload (one extra pad/slice
    # pass in XLA; still beats 3/4-masked vst.msk stores when D << 128).
    if L % LANES == 0:
        R = L // LANES
        xv = x.reshape(B, R, LANES)
        pev = pe_slice.reshape(R, LANES)
        padded = False
    else:
        L_pad = ((L + LANES - 1) // LANES) * LANES
        R = L_pad // LANES
        xv = jnp.pad(x.reshape(B, L), ((0, 0), (0, L_pad - L))).reshape(B, R, LANES)
        pev = jnp.pad(pe_slice.reshape(L), (0, L_pad - L)).reshape(R, LANES)
        padded = True
    C = LANES
    # TODO(synk): if the surrounding model keeps (B, S, D) with D < 128 in HBM,
    # XLA may insert relayout copies around these reshapes; keep the flattened
    # (B, R, 128) layout end-to-end in the model to avoid that extra pass.

    x_isz = jnp.dtype(xv.dtype).itemsize
    pe_isz = jnp.dtype(pev.dtype).itemsize
    o_isz = jnp.dtype(out_dtype).itemsize
    # Sublane-packing multiple for the most tightly packed dtype touched:
    # 8 rows for 4-byte, 16 for 2-byte, 32 for 1-byte.
    sub_mult = 32 // min(x_isz, pe_isz, o_isz)

    per_batch_bytes = R * C * x_isz
    if per_batch_bytes >= target_block_bytes:
        # Large per-batch payload: tile the row axis, one batch item per step.
        TB = 1
        rows = max(sub_mult, target_block_bytes // (C * x_isz))
        rows = (rows // sub_mult) * sub_mult
        TR = R if R <= rows else rows
    else:
        # Small per-batch payload (e.g. S=512, D=32 -> 64 KiB): block across
        # the batch axis so each DMA stays near target_block_bytes.
        TR = R
        TB = min(B, max(1, target_block_bytes // per_batch_bytes))
    num_t = pl.cdiv(R, TR)
    num_b = pl.cdiv(B, TB)

    # Grid: row-tile axis outer, batch-block axis inner -> the pe block index
    # only depends on t, so consecutive steps reuse the resident pe block.
    grid = (num_t, num_b)
    # v7x megacore: when there are >= 2 row tiles, force the 2-TC split onto t
    # (works even when B == 1 and preserves pe reuse per core); otherwise the
    # only useful split is the batch-block axis.
    if num_t >= 2:
        dims = ("parallel", "arbitrary")
    else:
        dims = ("arbitrary", "parallel")

    x_blk = TB * TR * C * x_isz
    pe_blk = TR * C * pe_isz
    o_blk = TB * TR * C * o_isz
    # Double-buffered x/pe/out blocks + headroom; cap below v7x's 64 MiB
    # physical VMEM (48 MiB is safe on v5e/v6e/v7x).
    vmem_limit = int(min(2 * (x_blk + pe_blk + o_blk) + (8 << 20), 48 << 20))

    # Alias x's HBM buffer to the output (pure read-then-overwrite per block);
    # only valid when no dtype promotion changes the byte width.
    io_alias = {0: 0} if xv.dtype == out_dtype else {}

    out = pl.pallas_call(
        _pe_add_kernel,
        out_shape=jax.ShapeDtypeStruct((B, R, C), out_dtype),
        grid=grid,
        in_specs=[
            pl.BlockSpec((TB, TR, C), lambda t, b: (b, t, 0)),
            pl.BlockSpec((TR, C), lambda t, b: (t, 0)),
        ],
        out_specs=pl.BlockSpec((TB, TR, C), lambda t, b: (b, t, 0)),
        input_output_aliases=io_alias,
        compiler_params=pltpu.CompilerParams(
            dimension_semantics=dims,
            vmem_limit_bytes=vmem_limit,
        ),
    )(xv, pev)

    if padded:
        out = out.reshape(B, R * C)[:, :L]
    return out.reshape(B, S, D)


if __name__ == "__main__":
    # Small shapes consistent with the module: batch=2, seq=8, d_model=32.
    B, S, D = 2, 8, 32
    MAX_LEN = 64  # >= S is sufficient for the test

    key = jax.random.PRNGKey(0)
    x = jax.random.normal(key, (B, S, D), dtype=jnp.float32)
    pe = make_positional_encoding(D, max_len=MAX_LEN)

    out = jax.block_until_ready(positional_encoding_forward(x, pe))
    ref = x + pe[None, :S, :]
    assert out.shape == (B, S, D)
    assert out.dtype == ref.dtype
    assert jnp.allclose(out, ref, atol=1e-6), "mismatch vs reference (main path)"

    # Exercise the pad-to-128 path (S*D not a multiple of 128).
    S2, D2 = 5, 30
    x2 = jax.random.normal(jax.random.PRNGKey(1), (B, S2, D2), dtype=jnp.float32)
    pe2 = make_positional_encoding(D2, max_len=MAX_LEN)
    out2 = jax.block_until_ready(positional_encoding_forward(x2, pe2))
    ref2 = x2 + pe2[None, :S2, :]
    assert out2.shape == (B, S2, D2)
    assert jnp.allclose(out2, ref2, atol=1e-6), "mismatch vs reference (padded path)"

    print("KERNEL_OK")
</pallas_src>

<mosaic_0001>
module attributes {stable_mosaic.version = 11 : i64} {
  func.func @_pe_add_kernel(%arg0: i32, %arg1: i32, %arg2: memref<2x2x128xf32, #tpu.memory_space<vmem>>, %arg3: memref<2x128xf32, #tpu.memory_space<vmem>>, %arg4: memref<2x2x128xf32, #tpu.memory_space<vmem>>) attributes {dimension_semantics = [#tpu.dimension_semantics<arbitrary>, #tpu.dimension_semantics<parallel>], iteration_bounds = array<i64: 1, 1>, scalar_prefetch = 0 : i64, scratch_operands = 0 : i64, tpu.core_type = #tpu.core_type<tc>, window_params = [{transform_indices = @transform_0, window_bounds = array<i64: 2, 2, 128>}, {transform_indices = @transform_1, window_bounds = array<i64: 2, 128>}, {transform_indices = @transform_2, window_bounds = array<i64: 2, 2, 128>}]} {
    %c0 = arith.constant 0 : index
    %c0_0 = arith.constant 0 : index
    %c0_1 = arith.constant 0 : index
    %0 = vector.load %arg2[%c0, %c0_0, %c0_1] : memref<2x2x128xf32, #tpu.memory_space<vmem>>, vector<2x2x128xf32>
    %c0_2 = arith.constant 0 : index
    %c0_3 = arith.constant 0 : index
    %1 = vector.load %arg3[%c0_2, %c0_3] : memref<2x128xf32, #tpu.memory_space<vmem>>, vector<2x128xf32>
    %2 = vector.shape_cast %1 : vector<2x128xf32> to vector<1x2x128xf32>
    %3 = vector.broadcast %2 : vector<1x2x128xf32> to vector<2x2x128xf32>
    %4 = arith.addf %0, %3 : vector<2x2x128xf32>
    %c0_4 = arith.constant 0 : index
    %c0_5 = arith.constant 0 : index
    %c0_6 = arith.constant 0 : index
    %5 = vector.load %arg4[%c0_4, %c0_5, %c0_6] : memref<2x2x128xf32, #tpu.memory_space<vmem>>, vector<2x2x128xf32>
    tpu.vector_store %arg4[%c0_4, %c0_5, %c0_6], %4 {strides = array<i32>} : memref<2x2x128xf32, #tpu.memory_space<vmem>>, vector<2x2x128xf32>,
    return
  }
  func.func @transform_0(%arg0: i32, %arg1: i32) -> (i32, i32, i32) {
    %c0_i32 = arith.constant 0 : i32
    %c0_i32_0 = arith.constant 0 : i32
    return %arg1, %arg0, %c0_i32 : i32, i32, i32
  }
  func.func @transform_1(%arg0: i32, %arg1: i32) -> (i32, i32) {
    %c0_i32 = arith.constant 0 : i32
    %c0_i32_0 = arith.constant 0 : i32
    return %arg0, %c0_i32 : i32, i32
  }
  func.func @transform_2(%arg0: i32, %arg1: i32) -> (i32, i32, i32) {
    %c0_i32 = arith.constant 0 : i32
    %c0_i32_0 = arith.constant 0 : i32
    return %arg1, %arg0, %c0_i32 : i32, i32, i32
  }
}

</mosaic_0001>

<bundles_post_ra>
// kernel: tpu_custom_call.1
= control target key start
LH: loop header
LB: loop body
LE: loop exit
PB: predicated region body
PF: predicated region fallthrough
CT: control target
= control target key end

     0   :  { %7 = vsyncpa [#allocation3], 0  ;;  %s126_s0 = inlined_call_operand.hbm [shape: f32[2,2,128], index: 0, kind: input, shape index: {}, may-alias: {0,2}]   ;;  %s127_s1 = inlined_call_operand.vmem [shape: f32[2,128], index: 1, kind: input, shape index: {}]   ;;  %s128_s2 = inlined_call_operand.hbm [shape: f32[2,2,128], index: 2, kind: output, shape index: {}, may-alias: {0,2}]  }
   0x1   :  { %8 = vsyncpa [#allocation4], 0  ;;  %s98_s9 = smov [#allocation2]  }
   0x2   :  { %s14_s10 = sshll.u32 %s98_s9, 4  ;;  %s15_s10 = int_to_ptr.vmem [resolvable:$true] %s14_s10 }
   0x3   :  { %s62_s11 = scalar_lea.vmem %s15_s10, 64  ;;  %p67_p1 = scmp.lt.s32.totalorder %s15_s10, %s15_s10 }
   0x4   :  { %p63_p0 = scmp.ne.s32.totalorder %s15_s10, %s62_s11  ;;  %p68_p2 = scmp.lt.s32.totalorder %s62_s11, %s62_s11 }
   0x6   :  { %p69_p3 = por %p68_p2, %p67_p1 }
   0x8   :  { %p70_p4 = pnand %p69_p3, %p63_p0 }
   0xa   :  { %73 = shalt.err (!%p70_p4)
}
   0xb   :  { %s99_s12 = smov 32   ;;  %s100_s13 = smov 2  }
   0xc   :  { %20 = dma.hbm_to_vmem [thread:$0]  %s126_s0, 64, %s15_s10, [#allocation3], %s99_s12, %s99_s12, %s100_s13  }
   0xd   :  { %94 = dma.done.wait [#allocation3], 64  }
   0xe   :  { %95 = vsyncadd [#allocation3], 4294967232  ;;  %s101_s16 = smov [#allocation5]   ;;  %v26_v0 = vld [vmem:[#allocation2] sm:$0x3] }
   0xf   :  { %s38_s17 = sshll.u32 %s101_s16, 4  ;;  %v28_v1 = vld [vmem:[%s127_s1] sm:$0x3]  ;;  %v27_v2 = vld [vmem:[#allocation2 + $0x2] sm:$0x3]  ;;  %s39_s17 = int_to_ptr.vmem [resolvable:$true] %s38_s17 }
  0x10   :  { %v29_v3 = vadd.f32 %v28_v1, %v26_v0  ;;  %v30_v4 = vadd.f32 %v28_v1, %v27_v2  ;;  %s74_s20 = scalar_lea.vmem %s39_s17, 64  ;;  %p79_p6 = scmp.lt.s32.totalorder %s39_s17, %s39_s17 }
  0x11   :  { %p75_p5 = scmp.ne.s32.totalorder %s39_s17, %s74_s20  ;;  %p80_p7 = scmp.lt.s32.totalorder %s74_s20, %s74_s20 }
  0x12   :  { %31 = vst [vmem:[#allocation5] sm:$0x3] %v29_v3  ;;  %32 = vst [vmem:[#allocation5 + $0x2] sm:$0x3] %v30_v4 }
  0x13   :  { %p81_p8 = por %p80_p7, %p79_p6 }
  0x15   :  { %p82_p9 = pnand %p81_p8, %p75_p5 }
  0x17   :  { %85 = shalt.err (!%p82_p9)
}
  0x18   :  { %44 = dma.vmem_to_hbm [thread:$0]  %s39_s17, 64, %s128_s2, [#allocation4], %s99_s12, %s99_s12, %s100_s13  }
  0x19   :  { %96 = dma.done.wait [#allocation4], 64  }
  0x1a   :  { %97 = vsyncadd [#allocation4], 4294967232 }
  0x1b   :  { %48 = vsyncpa [#allocation3], 1 }
  0x1c   :  { %49 = vsyncpa [#allocation4], 1 }

</bundles_post_ra>
